<compile_context>
chip_gen: v5e
topology: v5e:2x2
jax: 0.10.0
libtpu: 0.0.40
codegen_flags: <defaults>
</compile_context>

<pallas_src>
import math

import jax
import jax.numpy as jnp
from jax.experimental import pallas as pl
from jax.experimental.pallas import tpu as pltpu


# --------------------------------------------------------------------------- #
# Kernel bodies
# --------------------------------------------------------------------------- #
def _nlinear_kernel(x_ref, w_ref, b_ref, o_ref):
    # x_ref: (tb, tn, d_in), w_ref: (tn, d_in, td_out), b_ref: (tn, td_out),
    # o_ref: (tb, tn, td_out)
    x_t = jnp.swapaxes(x_ref[...], 0, 1)                  # (tn, tb, d_in): one relayout
    acc = jnp.einsum("tbi,tio->tbo", x_t, w_ref[...],
                     preferred_element_type=jnp.float32)  # batched MXU matmul, f32 acc
    acc = acc + b_ref[...].astype(jnp.float32)[:, None, :]  # one broadcast bias add
    o_ref[...] = jnp.swapaxes(acc, 0, 1).astype(o_ref.dtype)  # one lane-dense store


def _nlinear_kernel_nobias(x_ref, w_ref, o_ref):
    x_t = jnp.swapaxes(x_ref[...], 0, 1)
    acc = jnp.einsum("tbi,tio->tbo", x_t, w_ref[...],
                     preferred_element_type=jnp.float32)
    o_ref[...] = jnp.swapaxes(acc, 0, 1).astype(o_ref.dtype)


# --------------------------------------------------------------------------- #
# Generation-aware VMEM plan and tile selection
# --------------------------------------------------------------------------- #
def _vmem_plan():
    """Returns (footprint_budget_bytes, vmem_limit_bytes) sized per TPU gen."""
    cap = None
    try:
        info = pltpu.get_tpu_info()
        cap = getattr(info, "vmem_capacity_bytes", None)
    except Exception:
        cap = None
    if cap is None:
        cap = 64 * 1024 * 1024                      # conservative (v7x-sized) default
    if cap <= 64 * 1024 * 1024:
        # v7x-class: only 64 MiB VMEM per TensorCore -> fit comfortably.
        return 16 * 1024 * 1024, 48 * 1024 * 1024
    # v5e / v6e: 128 MiB physical VMEM (the default scoped limit is much
    # smaller, so the explicit vmem_limit_bytes below matters).
    return 32 * 1024 * 1024, 64 * 1024 * 1024


def _pick_dout_tile(d_out, d_in, w_item, weight_budget):
    """d_out block: full d_out unless even a tn=8 weight slab overflows; then a
    multiple of 128 (lane-tiling requirement for a partial last dim)."""
    def fits(td):
        return 2 * 8 * d_in * td * w_item <= weight_budget   # double-buffered
    if d_out <= 128 or fits(d_out):
        return d_out
    td = (d_out // 128) * 128
    while td > 128 and not fits(td):
        td -= 128
    return td


def _pick_token_tile(n_tokens, per_token_w_bytes, weight_budget, cap=64):
    """Token block: full N when small/cheap, else a multiple of 8 (sublane rule)."""
    def fits(t):
        return 2 * t * per_token_w_bytes <= weight_budget
    if n_tokens <= 8:
        return n_tokens                       # full axis (exempt from the 8-rule)
    if n_tokens <= cap and fits(n_tokens):
        return n_tokens
    tn = max(8, min(cap, (n_tokens // 8) * 8))
    while tn > 8 and not fits(tn):
        tn -= 8
    return tn


def _pick_batch_tile(batch, per_row_bytes, budget, cap):
    """Largest batch block (multiple of 8 when >= 8) whose footprint fits."""
    if batch <= 8:
        return batch
    tb = max(1, budget // max(per_row_bytes, 1))
    tb = min(tb, cap, batch)
    if tb >= 8:
        tb = (tb // 8) * 8
    return max(tb, 1)


# --------------------------------------------------------------------------- #
# Public wrapper
# --------------------------------------------------------------------------- #
def nlinear_forward(x, weight, bias=None, *, compute_dtype=None):
    """x: (B, N, d_in), weight: (N, d_in, d_out), bias: (N, d_out) or None.

    compute_dtype: optional dtype (e.g. jnp.bfloat16) for the matmul inputs
    (cast in the wrapper so HBM traffic shrinks); accumulation stays float32
    and the output keeps x's original dtype.
    """
    if x.ndim != 3:
        raise ValueError(
            "The input must have three dimensions (batch_size, n_tokens, d_embedding)"
        )
    B, N, d_in = x.shape
    Nw, d_in_w, d_out = weight.shape
    if N != Nw or d_in != d_in_w:
        raise ValueError("weight shape does not match input")
    if bias is not None and tuple(bias.shape) != (N, d_out):
        raise ValueError("bias shape does not match weight")

    out_dtype = x.dtype
    if compute_dtype is not None:
        # Pre-cast in the wrapper: the BlockSpec DMA then moves the narrow bytes.
        x = x.astype(compute_dtype)
        weight = weight.astype(compute_dtype)

    x_item = jnp.dtype(x.dtype).itemsize
    w_item = jnp.dtype(weight.dtype).itemsize
    b_item = jnp.dtype(bias.dtype).itemsize if bias is not None else 0
    o_item = jnp.dtype(out_dtype).itemsize

    budget, vmem_limit = _vmem_plan()
    weight_budget = budget // 2                        # reserve half for the weight

    td_out = _pick_dout_tile(d_out, d_in, w_item, weight_budget)
    tn = _pick_token_tile(N, d_in * td_out * w_item, weight_budget)

    # Remaining budget covers the (double-buffered) x/out blocks plus the
    # in-kernel token-major x copy and the f32 accumulator.
    remaining = budget - 2 * tn * (d_in * td_out * w_item + td_out * b_item)
    per_row = (2 * tn * (d_in * x_item + td_out * o_item)   # pipelined x/out blocks
               + tn * d_in * x_item                          # token-major x copy
               + tn * td_out * 4)                            # f32 accumulator
    cap_tb = 256 if td_out >= 128 else 512       # keep epilogue vreg pressure sane
    tb = _pick_batch_tile(B, per_row, max(remaining, per_row), cap_tb)

    n_tok_tiles = pl.cdiv(N, tn)
    n_out_tiles = pl.cdiv(d_out, td_out)
    # Give both TensorCores work (matters on v7x): when the token/d_out grid
    # collapses to a single tile, split the batch into >= 2 blocks.  The weight
    # tile stays VMEM-resident across the inner batch axis either way.
    if n_tok_tiles * n_out_tiles == 1 and B >= 2:
        tb = min(tb, -(-B // 2))
    n_b_tiles = pl.cdiv(B, tb)

    grid = (n_tok_tiles, n_out_tiles, n_b_tiles)   # batch innermost -> weight reuse

    x_spec = pl.BlockSpec((tb, tn, d_in), lambda jn, jo, ib: (ib, jn, 0))
    w_spec = pl.BlockSpec((tn, d_in, td_out), lambda jn, jo, ib: (jn, 0, jo))
    o_spec = pl.BlockSpec((tb, tn, td_out), lambda jn, jo, ib: (ib, jn, jo))
    out_shape = jax.ShapeDtypeStruct((B, N, d_out), out_dtype)

    compiler_params = pltpu.CompilerParams(
        dimension_semantics=("parallel", "parallel", "parallel"),
        vmem_limit_bytes=vmem_limit,
    )

    if bias is not None:
        b_spec = pl.BlockSpec((tn, td_out), lambda jn, jo, ib: (jn, jo))
        return pl.pallas_call(
            _nlinear_kernel,
            out_shape=out_shape,
            grid_spec=pltpu.PrefetchScalarGridSpec(
                num_scalar_prefetch=0,
                grid=grid,
                in_specs=[x_spec, w_spec, b_spec],
                out_specs=o_spec,
            ),
            compiler_params=compiler_params,
        )(x, weight, bias)

    return pl.pallas_call(
        _nlinear_kernel_nobias,
        out_shape=out_shape,
        grid_spec=pltpu.PrefetchScalarGridSpec(
            num_scalar_prefetch=0,
            grid=grid,
            in_specs=[x_spec, w_spec],
            out_specs=o_spec,
        ),
        compiler_params=compiler_params,
    )(x, weight)


def init_nlinear_params(key, n_tokens, d_in, d_out, bias=True, dtype=jnp.float32):
    """Matches NLinear.reset_parameters: U(-1/sqrt(d_in), 1/sqrt(d_in))."""
    bound = 1.0 / math.sqrt(d_in)
    kw, kb = jax.random.split(key)
    weight = jax.random.uniform(
        kw, (n_tokens, d_in, d_out), dtype=dtype, minval=-bound, maxval=bound
    )
    b = (
        jax.random.uniform(
            kb, (n_tokens, d_out), dtype=dtype, minval=-bound, maxval=bound
        )
        if bias
        else None
    )
    return weight, b


if __name__ == "__main__":
    key = jax.random.PRNGKey(0)
    k_x, k_p = jax.random.split(key)

    B, N, D_IN, D_OUT = 2, 8, 32, 16
    x = jax.random.normal(k_x, (B, N, D_IN), dtype=jnp.float32)
    weight, bias = init_nlinear_params(k_p, N, D_IN, D_OUT, bias=True)

    # Reference (same semantics as the torch forward).
    ref = jnp.einsum("bni,nio->bno", x, weight) + bias[None]

    out = jax.block_until_ready(nlinear_forward(x, weight, bias))
    assert out.shape == (B, N, D_OUT)
    assert jnp.allclose(out, ref, atol=1e-5, rtol=1e-5)

    # No-bias path.
    out_nb = jax.block_until_ready(nlinear_forward(x, weight, None))
    assert jnp.allclose(
        out_nb, jnp.einsum("bni,nio->bno", x, weight), atol=1e-5, rtol=1e-5
    )

    # bf16 compute path (inputs pre-cast in the wrapper, f32 accumulation).
    out_bf16 = jax.block_until_ready(
        nlinear_forward(x, weight, bias, compute_dtype=jnp.bfloat16)
    )
    assert out_bf16.dtype == x.dtype
    assert jnp.allclose(out_bf16, ref, atol=3e-2, rtol=3e-2)

    print("KERNEL_OK")
</pallas_src>

<mosaic_0001>
module attributes {stable_mosaic.version = 11 : i64} {
  func.func @_nlinear_kernel(%arg0: i32, %arg1: i32, %arg2: i32, %arg3: memref<1x8x32xf32, #tpu.memory_space<vmem>>, %arg4: memref<8x32x16xf32, #tpu.memory_space<vmem>>, %arg5: memref<8x16xf32, #tpu.memory_space<vmem>>, %arg6: memref<1x8x16xf32, #tpu.memory_space<vmem>>) attributes {dimension_semantics = [#tpu.dimension_semantics<parallel>, #tpu.dimension_semantics<parallel>, #tpu.dimension_semantics<parallel>], iteration_bounds = array<i64: 1, 1, 2>, scalar_prefetch = 0 : i64, scratch_operands = 0 : i64, tpu.core_type = #tpu.core_type<tc>, window_params = [{transform_indices = @transform_0, window_bounds = array<i64: 1, 8, 32>}, {transform_indices = @transform_1, window_bounds = array<i64: 8, 32, 16>}, {transform_indices = @transform_2, window_bounds = array<i64: 8, 16>}, {transform_indices = @transform_3, window_bounds = array<i64: 1, 8, 16>}]} {
    %c0 = arith.constant 0 : index
    %c0_0 = arith.constant 0 : index
    %c0_1 = arith.constant 0 : index
    %0 = vector.load %arg3[%c0, %c0_0, %c0_1] : memref<1x8x32xf32, #tpu.memory_space<vmem>>, vector<1x8x32xf32>
    %1 = tpu.transpose %0, [1, 0, 2] : vector<1x8x32xf32> -> vector<8x1x32xf32>
    %c0_2 = arith.constant 0 : index
    %c0_3 = arith.constant 0 : index
    %c0_4 = arith.constant 0 : index
    %2 = vector.load %arg4[%c0_2, %c0_3, %c0_4] : memref<8x32x16xf32, #tpu.memory_space<vmem>>, vector<8x32x16xf32>
    "tpu.trace_start"() <{level = 10 : i32, message = "tbi,tio->tbo"}> : () -> ()
    %cst = arith.constant dense<0.000000e+00> : vector<8x1x16xf32>
    %3 = tpu.matmul %1, %2, %cst {dimension_numbers = #tpu.dot_dimension_numbers<[2], [1], [1], [2], [0, 0, 0, 1, 1, 2], [0], [0]>} : vector<8x1x32xf32>, vector<8x32x16xf32>, vector<8x1x16xf32> -> vector<8x1x16xf32>
    "tpu.trace_stop"() : () -> ()
    %c0_5 = arith.constant 0 : index
    %c0_6 = arith.constant 0 : index
    %4 = vector.load %arg5[%c0_5, %c0_6] : memref<8x16xf32, #tpu.memory_space<vmem>>, vector<8x16xf32>
    %5 = vector.shape_cast %4 : vector<8x16xf32> to vector<8x1x16xf32>
    %6 = arith.addf %3, %5 : vector<8x1x16xf32>
    %7 = tpu.transpose %6, [1, 0, 2] : vector<8x1x16xf32> -> vector<1x8x16xf32>
    %c0_7 = arith.constant 0 : index
    %c0_8 = arith.constant 0 : index
    %c0_9 = arith.constant 0 : index
    %8 = vector.load %arg6[%c0_7, %c0_8, %c0_9] : memref<1x8x16xf32, #tpu.memory_space<vmem>>, vector<1x8x16xf32>
    tpu.vector_store %arg6[%c0_7, %c0_8, %c0_9], %7 {strides = array<i32>} : memref<1x8x16xf32, #tpu.memory_space<vmem>>, vector<1x8x16xf32>,
    return
  }
  func.func @transform_0(%arg0: i32, %arg1: i32, %arg2: i32) -> (i32, i32, i32) {
    %c0_i32 = arith.constant 0 : i32
    %c0_i32_0 = arith.constant 0 : i32
    return %arg2, %arg0, %c0_i32 : i32, i32, i32
  }
  func.func @transform_1(%arg0: i32, %arg1: i32, %arg2: i32) -> (i32, i32, i32) {
    %c0_i32 = arith.constant 0 : i32
    %c0_i32_0 = arith.constant 0 : i32
    return %arg0, %c0_i32, %arg1 : i32, i32, i32
  }
  func.func @transform_2(%arg0: i32, %arg1: i32, %arg2: i32) -> (i32, i32) {
    %c0_i32 = arith.constant 0 : i32
    return %arg0, %arg1 : i32, i32
  }
  func.func @transform_3(%arg0: i32, %arg1: i32, %arg2: i32) -> (i32, i32, i32) {
    %c0_i32 = arith.constant 0 : i32
    return %arg2, %arg0, %arg1 : i32, i32, i32
  }
}

</mosaic_0001>

<bundles_post_ra>
// kernel: tpu_custom_call.1
= control target key start
LH: loop header
LB: loop body
LE: loop exit
PB: predicated region body
PF: predicated region fallthrough
CT: control target
= control target key end

     0   :  { %8 = vsyncpa [#allocation3], 0  ;;  %s1123_s0 = inlined_call_operand.vmem [shape: f32[2,8,32], index: 0, kind: input, shape index: {}]   ;;  %s1124_s1 = inlined_call_operand.vmem [shape: f32[8,32,16], index: 1, kind: input, shape index: {}]   ;;  %s1125_s2 = inlined_call_operand.vmem [shape: f32[8,16], index: 2, kind: input, shape index: {}]   ;;  %s1126_s3 = inlined_call_operand.hbm [shape: f32[2,8,16], index: 3, kind: output, shape index: {}]  }
   0x1   :  { %10 = vsyncpa [#allocation3 + $0x1], 0  ;;  %s889_s12 = smov 0   ;;  %s891_s13 = smov 0  }
   0x2   :  { %s893_s14 = smov 0   ;;  %s895_s15 = smov 0  }
   0x3   :  { %s897_s16 = smov 0   ;;  %s899_s17 = smov 0  }
   0x4 LB: > { %s709_s18 = sadd.s32 4294967295, %s865_s17   ;;  %s710_s19 = sadd.s32 4294967294, %s865_s17   ;;  %s865_s17 = sphi %s899_s17, %s16_s17   ;;  %s861_s16 = sphi %s897_s16, %s1133_s16   ;;  %s857_s15 = sphi %s895_s15, %s1132_s15   ;;  %s853_s14 = sphi %s893_s14, %s1131_s14   ;;  %s849_s13 = sphi %s891_s13, %s1130_s13   ;;  %s845_s12 = sphi %s889_s12, %s1129_s12  }
   0x5   : > { %s28_s20 = sadd.s32 1, %s861_s16  ;;  %s130_s21 = sadd.s32 1, %s853_s14 }
   0x6   : > { %p29_p0 = scmp.ge.s32.totalorder %s28_s20, 2  ;;  %p140_p1 = scmp.ne.s32.totalorder %s853_s14, %s849_s13 }
   0x7   : > { %p141_p2 = scmp.eq.s32.totalorder %s709_s18, 1  ;;  %p146_p3 = scmp.ne.s32.totalorder %s849_s13, %s845_s12 }
   0x8   : > { %s1135_s20 = smov (%p29_p0, %s28_s20), 0  ;;  %p147_p5 = scmp.eq.s32.totalorder %s710_s19, 1 }
   0x9   : > { %p929_p4 = por %p141_p2, %p140_p1  ;;  %s123_s23 = ssub.s32 %s861_s16, %s1135_s20 }
   0xa   : > { %p715_p6 = scmp.ge.s32.totalorder %s865_s17, 1  ;;  %p128_p7 = scmp.eq.s32.totalorder %s123_s23, 0 }
   0xb   : > { %p936_p8 = por %p147_p5, %p146_p3  ;;  %p198_p9 = scmp.lt.s32.totalorder %s865_s17, 3 }
   0xc   : > { %s942_s25 = scalar_select %p128_p7, %s853_s14, %s130_s21  }
   0xd   : > { %p199_p10 = pnand %p715_p6, %p198_p9 }
   0xe   : > { %p240_p11 = scmp.lt.s32.totalorder (!%p199_p10), %s857_s15, 1  ;;  %s237_s29 = sand.u32 (!%p199_p10), 1, %s849_s13  }
   0xf   : > { %202 = sbr.rel (%p199_p10) target bundleno = 194 (0xc2), region = 32  ;;  %s716_s30 = sshll.u32 (!%p199_p10), %s237_s29, 3 }
  0x10   : > { %s727_s4 = sshll.u32 (!%p199_p10), %s857_s15, 3  ;;  %s578_s10 = scalar_lea.sflag (!%p199_p10), [#allocation3], %s237_s29 }
  0x11   : > { %s590_s7 = scalar_lea.hbm (!%p199_p10), %s1126_s3, %s727_s4  ;;  %s807_s23 = scalar_lea.hbm (!%p199_p10), %s1126_s3, 16 }
  0x12   : > { %s594_s9 = sshll.u32 (!%p199_p10), %s590_s7, 4  ;;  %s595_s9 = int_to_ptr.hbm [resolvable:$true] %s594_s9 }
  0x14   : > { %v319_v0 = vld [vmem:[%s1124_s1 + $0x78] sm:$0xff]  ;;  %v318_v2 = vld [vmem:[%s1124_s1 + $0x70] sm:$0xff]  ;;  %v317_v4 = vld [vmem:[%s1124_s1 + $0x68] sm:$0xff]  ;;  %s241_s11 = scalar_select %p240_p11, %s857_s15, 1  ;;  %v867_v6 = vmov 1983009808  }
  0x15   : > { %v315_v1 = vld [vmem:[%s1124_s1 + $0x58] sm:$0xff]  ;;  %437 = vmatpush.msra.mxu3 %v319_v0  ;;  %v314_v3 = vld [vmem:[%s1124_s1 + $0x50] sm:$0xff]  ;;  %v313_v5 = vld [vmem:[%s1124_s1 + $0x48] sm:$0xff]  ;;  %v269_v7 = vunpack.c.l.s4 %v867_v6  ;;  %v868_v10 = vmov 1934713408   ;;  %vm266_vm0 = vcmask 1047556  }
  0x16   : > { %414 = vmatpush.msra.mxu2 %v315_v1  ;;  %v311_v8 = vld [vmem:[%s1124_s1 + $0x38] sm:$0xff]  ;;  %v316_v9 = vld [vmem:[%s1124_s1 + $0x60] sm:$0xff]  ;;  %v279_v11 = vunpack.c.l.s4 %v868_v10  ;;  %s717_s26 = sshll.u32 %s241_s11, 3  ;;  %v310_v15 = vld [vmem:[%s1124_s1 + $0x30] sm:$0xff]  ;;  %vm352_vm1 = vcmask 261120   ;;  %s239_s15 = scalar_lea.vmem [#allocation2], %s716_s30 }
  0x17   : > { %438 = vmatpush.msra.mxu3 %v318_v2  ;;  %v970_v12 = vunpack.c.0.s8 %v269_v7  ;;  %391 = vmatpush.msra.mxu1 %v311_v8  ;;  %v312_v13 = vld [vmem:[%s1124_s1 + $0x40] sm:$0xff]  ;;  %v307_v14 = vld [vmem:[%s1124_s1 + $0x18] sm:$0xff]  ;;  %s246_s8 = scalar_lea.vmem %s1123_s0, %s717_s26  ;;  %v306_v19 = vld [vmem:[%s1124_s1 + $0x10] sm:$0xff]  ;;  %vm575_vm2 = vcmask 130048   ;;  %s801_s11 = sshra.s32 %s595_s9, 4  ;;  %s802_s11 = int_to_ptr.hbm [resolvable:$true] %s801_s11 }
  0x18   : > { %415 = vmatpush.msra.mxu2 %v314_v3  ;;  %v335_v16 = vld [vmem:[%s1124_s1 + $0xf8] sm:$0xff]  ;;  %v264_v18 = vld [vmem:[%s246_s8] sm:$0xff]  ;;  %368 = vmatpush.msra.mxu0 %v307_v14  ;;  %v309_v20 = vld [vmem:[%s1124_s1 + $0x28] sm:$0xff]  ;;  %v997_v23 = vunpack.c.0.s8 %v279_v11  ;;  %s592_s8 = sshll.u32 %s239_s15, 4  ;;  %s803_s18 = scalar_lea.hbm %s802_s11, 8  ;;  %s593_s8 = int_to_ptr.vmem [resolvable:$true] %s592_s8 }
  0x19   : > { %439 = vmatpush.msra.mxu3 %v317_v4  ;;  %v331_v17 = vld [vmem:[%s1124_s1 + $0xd8] sm:$0xff]  ;;  %392 = vmatpush.msra.mxu1 %v310_v15  ;;  %v265_v21 = vrot.slane %v264_v18, 4  ;;  %v271_v22 = vperm.slane %v264_v18, %v970_v12  ;;  %v334_v24 = vld [vmem:[%s1124_s1 + $0xf0] sm:$0xff]  ;;  %v305_v26 = vld [vmem:[%s1124_s1 + $0x8] sm:$0xff]  ;;  %p804_p12 = scmp.ne.s32.totalorder %s802_s11, %s803_s18  ;;  %p808_p1 = scmp.lt.s32.totalorder %s802_s11, %s1126_s3 }
  0x1a   : > { %416 = vmatpush.msra.mxu2 %v313_v5  ;;  %v330_v25 = vld [vmem:[%s1124_s1 + $0xd0] sm:$0xff]  ;;  %v308_v27 = vld [vmem:[%s1124_s1 + $0x20] sm:$0xff]  ;;  %v333_v29 = vld [vmem:[%s1124_s1 + $0xe8] sm:$0xff]  ;;  %369 = vmatpush.msra.mxu0 %v306_v19  ;;  %p809_p2 = scmp.lt.s32.totalorder %s807_s23, %s803_s18 }
  0x1b   : > { %440 = vmatpush.msra.mxu3 %v316_v9  ;;  %v276_v28 = vrot.slane %v271_v22, 4  ;;  %393 = vmatpush.msra.mxu1 %v309_v20  ;;  %v329_v30 = vld [vmem:[%s1124_s1 + $0xc8] sm:$0xff]  ;;  %v281_v31 = vperm.slane %v271_v22, %v997_v23  ;;  %v267_v32 = vsel %vm266_vm0, 0.0, %v265_v21  ;;  %v327_v33 = vld [vmem:[%s1124_s1 + $0xb8] sm:$0xff]  ;;  %v304_v35 = vld [vmem:[%s1124_s1] sm:$0xff]  ;;  %p805_p13 = pnand %p804_p12, %p929_p4 }
  0x1c   : > { %417 = vmatpush.msra.mxu2 %v312_v13  ;;  %v275_v34 = vperm.slane %v267_v32, %v970_v12  ;;  %v332_v37 = vld [vmem:[%s1124_s1 + $0xe0] sm:$0xff]  ;;  %370 = vmatpush.msra.mxu0 %v305_v26  ;;  %v326_v44 = vld [vmem:[%s1124_s1 + $0xb0] sm:$0xff]  ;;  %v323_v47 = vld [vmem:[%s1124_s1 + $0x98] sm:$0xff]  ;;  %p810_p3 = por %p809_p2, %p808_p1 }
  0x1d   : > { %529 = vmatpush.msrb.mxu3 %v335_v16  ;;  %v277_v36 = vsel %vm266_vm0, 0.0, %v276_v28  ;;  %394 = vmatpush.msra.mxu1 %v308_v27  ;;  %v296_v38 = vrot.slane %v281_v31, 4  ;;  %v328_v40 = vld [vmem:[%s1124_s1 + $0xc0] sm:$0xff]  ;;  %v325_v49 = vld [vmem:[%s1124_s1 + $0xa8] sm:$0xff]  ;;  %v322_v51 = vld [vmem:[%s1124_s1 + $0x90] sm:$0xff]  ;;  %p806_p0 = pneg %p805_p13 }
  0x1e   : > { %506 = vmatpush.msrb.mxu2 %v331_v17  ;;  %v285_v39 = vperm.slane %v277_v36, %v997_v23  ;;  %v286_v41 = vrot.slane %v275_v34, 4  ;;  %v291_v42 = vperm.slane %v275_v34, %v997_v23  ;;  %371 = vmatpush.msra.mxu0 %v304_v35  ;;  %v324_v53 = vld [vmem:[%s1124_s1 + $0xa0] sm:$0xff]  ;;  %v321_v55 = vld [vmem:[%s1124_s1 + $0x88] sm:$0xff] }
  0x1f   : > { %530 = vmatpush.msrb.mxu3 %v334_v24  ;;  %v297_v43 = vsel %vm266_vm0, 0.0, %v296_v38  ;;  %483 = vmatpush.msrb.mxu1 %v327_v33  ;;  %v320_v56 = vld [vmem:[%s1124_s1 + $0x80] sm:$0xff]  ;;  %p811_p5 = pnand %p810_p3, %p806_p0 }
  0x20   : > { %507 = vmatpush.msrb.mxu2 %v330_v25  ;;  %v298_v45 = vrot.slane %v285_v39, 4  ;;  %v287_v46 = vsel %vm266_vm0, 0.0, %v286_v41  ;;  %719 = vmatmul.msk.f32.vlgmr.msra.gmra.mxu1 %vm352_vm1, %v297_v43  ;;  %v300_v52 = vrot.slane %v291_v42, 4  ;;  %v336_v59 = vld [vmem:[%s1125_s2] sm:$0xff] }
  0x21   : > { %531 = vmatpush.msrb.mxu3 %v333_v29  ;;  %720 = vmatmul.msk.f32.vlgmr.msra.gmra.mxu2 %vm352_vm1, %v285_v39  ;;  %v295_v48 = vperm.slane %v287_v46, %v997_v23  ;;  %v340_v62 = vrot.slane %v336_v59, 3  ;;  %v338_v0 = vrot.slane %v336_v59, 1  ;;  %v339_v1 = vrot.slane %v336_v59, 2 }
  0x22   : > { %508 = vmatpush.msrb.mxu2 %v329_v30  ;;  %v299_v50 = vsel %vm266_vm0, 0.0, %v298_v45  ;;  %718 = vmatmul.msk.f32.vlgmr.msra.gmra.mxu0 %vm352_vm1, %v281_v31  ;;  %v301_v57 = vsel %vm266_vm0, 0.0, %v300_v52  ;;  %v343_v4 = vrot.slane %v336_v59, 6  ;;  %v341_v8 = vrot.slane %v336_v59, 4 }
  0x23   : > { %532 = vmatpush.msrb.mxu3 %v332_v37  ;;  %484 = vmatpush.msrb.mxu1 %v326_v44  ;;  %v302_v54 = vrot.slane %v295_v48, 4  ;;  %v344_v10 = vrot.slane %v336_v59, 7  ;;  %v342_v11 = vrot.slane %v336_v59, 5 }
  0x24   : > { %509 = vmatpush.msrb.mxu2 %v328_v40  ;;  %721 = vmatmul.msk.f32.vlgmr.msra.gmra.mxu3 %vm352_vm1, %v299_v50 }
  0x25   : > { %460 = vmatpush.msrb.mxu0 %v323_v47  ;;  %485 = vmatpush.msrb.mxu1 %v325_v49  ;;  %v303_v58 = vsel %vm266_vm0, 0.0, %v302_v54 }
  0x27   : > { %461 = vmatpush.msrb.mxu0 %v322_v51  ;;  %486 = vmatpush.msrb.mxu1 %v324_v53 }
  0x28   : > { %723 = vmatmul.msk.f32.vlgmr.msrb.gmra.mxu1 %vm352_vm1, %v301_v57 }
  0x29   : > { %462 = vmatpush.msrb.mxu0 %v321_v55  ;;  %724 = vmatmul.msk.f32.vlgmr.msrb.gmra.mxu2 %vm352_vm1, %v295_v48 }
  0x2b   : > { %463 = vmatpush.msrb.mxu0 %v320_v56 }
  0x2c   : > { %722 = vmatmul.msk.f32.vlgmr.msrb.gmra.mxu0 %vm352_vm1, %v291_v42  ;;  %725 = vmatmul.msk.f32.vlgmr.msrb.gmra.mxu3 %vm352_vm1, %v303_v58 }
  0x9d   : > { %v396_v61 = vpop.f32.mrf.mxu1 }
  0x9e   : > { %v397_v6 = vadd.f32 %v396_v61, %v338_v0 }
  0x9f   : > { %v373_v60 = vpop.f32.mrf.mxu0 }
  0xa0   : > { %v374_v18 = vadd.f32 %v373_v60, %v336_v59 }
  0xa4   : > { %v419_v63 = vpop.f32.mrf.mxu2 }
  0xa5   : > { %v420_v7 = vadd.f32 %v419_v63, %v339_v1  ;;  %v488_v14 = vpop.f32.mrf.mxu1 }
  0xa6   : > { %v489_v24 = vadd.f32 %v488_v14, %v342_v11 }
  0xa7   : > { %v442_v2 = vpop.f32.mrf.mxu3  ;;  %v537_v17 = vrot.slane %v420_v7, 4 }
  0xa8   : > { %v443_v3 = vadd.f32 %v442_v2, %v340_v62 }
  0xa9   : > { %v465_v9 = vpop.f32.mrf.mxu0  ;;  %v538_v26 = vsel %vm266_vm0, %v537_v17, %v374_v18 }
  0xaa   : > { %v543_v5 = vrot.slane %v443_v3, 4  ;;  %v466_v19 = vadd.f32 %v465_v9, %v341_v8  ;;  %v542_v31 = vperm.slane %v538_v26, %v970_v12 }
  0xac   : > { %v511_v13 = vpop.f32.mrf.mxu2  ;;  %v544_v16 = vsel %vm266_vm0, %v543_v5, %v397_v6 }
  0xad   : > { %v512_v15 = vadd.f32 %v511_v13, %v343_v4  ;;  %v548_v25 = vperm.slane %v544_v16, %v970_v12 }
  0xaf   : > { %v534_v20 = vpop.f32.mrf.mxu3  ;;  %v549_v21 = vrot.slane %v512_v15, 4  ;;  %v561_v30 = vrot.slane %v548_v25, 4 }
  0xb0   : > { %v535_v22 = vadd.f32 %v534_v20, %v344_v10 }
  0xb1   : > { %v550_v28 = vsel %vm266_vm0, %v549_v21, %v466_v19  ;;  %v562_v35 = vsel %vm266_vm0, %v561_v30, %v542_v31 }
  0xb2   : > { %v555_v27 = vrot.slane %v535_v22, 4  ;;  %v554_v33 = vperm.slane %v550_v28, %v970_v12  ;;  %v566_v38 = vperm.slane %v562_v35, %v997_v23 }
  0xb4   : > { %v556_v29 = vsel %vm266_vm0, %v555_v27, %v489_v24 }
  0xb5   : > { %v560_v32 = vperm.slane %v556_v29, %v970_v12 }
  0xb7   : > { %v567_v34 = vrot.slane %v560_v32, 4 }
  0xb9   : > { %v568_v36 = vsel %vm266_vm0, %v567_v34, %v554_v33 }
  0xba   : > { %v572_v37 = vperm.slane %v568_v36, %v997_v23 }
  0xbc   : > { %v573_v39 = vrot.slane %v572_v37, 4 }
  0xbe   : > { %v574_v12 = vsel %vm266_vm0, %v573_v39, %v566_v38 }
  0xbf   : > { %576 = vst.msk [vmem:[%s239_s15] sm:$0xff] %vm575_vm2, %v574_v12 }
  0xc0   : > { %814 = shalt.err (!%p811_p5)
}
  0xc1   : > { %730 = dma.vmem_to_hbm [thread:$0]  (%p929_p4), %s593_s8, 128, %s595_s9, %s578_s10  }
  0xc2 PF: > { %p736_p6 = scmp.ge.s32.totalorder %s865_s17, 2  ;;  %s606_s28 = sand.u32 1, %s845_s12  }
  0xc3   : > { %s607_s29 = scalar_lea.sflag [#allocation3], %s606_s28 }
  0xc4   : > { %p733_p7 = pnand %p736_p6, %p936_p8 }
  0xc6   : > { %p734_p9 = pneg %p733_p7 }
  0xc8   : > { %840 = dma.done.wait (%p734_p9), %s607_s29, 128  }
  0xc9   : > { %842 = vsyncadd (%p734_p9), %s607_s29, 4294967168  ;;  %s16_s17 = sadd.s32 1, %s865_s17   ;;  %s1129_s12 = smov %s849_s13 }
  0xca   : > { %p13_p10 = scmp.ge.s32.totalorder %s16_s17, 4   ;;  %s1130_s13 = smov %s853_s14 }
  0xcb   : > { %s1131_s14 = smov %s942_s25  ;;  %s1132_s15 = smov %s861_s16 }
  0xcc   : > { %s1133_s16 = smov %s1135_s20  ;;  %15 = sbr.rel (!%p13_p10) target bundleno = 4 (0x4), region = 73 }
  0xd1   :  { %613 = vsyncpa [#allocation3], 1 }
  0xd2   :  { %615 = vsyncpa [#allocation3 + $0x1], 1 }

</bundles_post_ra>
